<compile_context>
chip_gen: v7x
topology: tpu7x:2x2x1
jax: 0.10.0
libtpu: 0.0.40
codegen_flags: <defaults>
</compile_context>

<pallas_src>
import math
import functools

import jax
import jax.numpy as jnp
from jax.experimental import pallas as pl
from jax.experimental.pallas import tpu as pltpu

# ---------------- config (small, consistent with the module) ----------------
BATCH = 2
SEQ = 8
HIDDEN = 32
NUM_HEADS = 4
D_K = HIDDEN // NUM_HEADS
INTER = 64
EPS = 1e-6


# ---------------------------- the fused kernel ------------------------------
def encoder_block_kernel(
    x_ref,       # (B*L, H)
    qkvs_ref,    # (H+1, 3H): rows [0:H] = Wq|Wk|Wv (norm + 1/sqrt(dk) folded), row H = bias
    w12s_ref,    # (H+1, 2I): rows [0:H] = W1|W2 (ffn norm folded), row H = bias
    outs_ref,    # (H+I+2, H): rows [0:H]=Wfc, [H:H+I]=W3, row H+I = bfc, row H+I+1 = b3
    o_ref,       # (B*L, H)
    *, batch, seq, hidden, inter, num_heads, d_k, eps,
):
    bl = batch * seq
    x = x_ref[...].astype(jnp.float32)                       # (BL, H)

    def rms_normalize(v):
        ms = jnp.mean(v * v, axis=-1, keepdims=True)
        return v * jax.lax.rsqrt(ms + eps)                   # norm weight folded into W

    # ---------------- fused QKV projection (single matmul, N=3H) ----------------
    xhat = rms_normalize(x)
    wqkv = qkvs_ref[0:hidden, :]                             # (H, 3H)
    bqkv = qkvs_ref[hidden:hidden + 1, :]                    # (1, 3H)
    qkv = jnp.dot(xhat, wqkv, preferred_element_type=jnp.float32) + bqkv   # (BL, 3H)

    # q already carries the 1/sqrt(d_k) attention scale (folded in the wrapper)
    q = qkv[:, 0:hidden].reshape(batch, seq, hidden)         # (B, L, H)
    k = qkv[:, hidden:2 * hidden].reshape(batch, seq, hidden)
    v = qkv[:, 2 * hidden:3 * hidden].reshape(batch, seq, hidden)

    # -------- attention: static head loop, batched over batch; fc accumulated --------
    wfc = outs_ref[0:hidden, :]                              # (H, H)
    bfc = outs_ref[hidden + inter:hidden + inter + 1, :]     # (1, H)
    x1 = x + bfc                                             # residual + fc bias (dropout = id)
    for h in range(num_heads):                               # static loop over heads
        lo = h * d_k
        qh = q[:, :, lo:lo + d_k]                            # (B, L, d_k)
        kh = k[:, :, lo:lo + d_k]
        vh = v[:, :, lo:lo + d_k]
        s = jnp.einsum("bld,bmd->blm", qh, kh,
                       preferred_element_type=jnp.float32)   # (B, L, L), pre-scaled
        p = jax.nn.softmax(s, axis=-1)                       # mask=None path
        oh = jnp.einsum("blm,bmd->bld", p, vh,
                        preferred_element_type=jnp.float32)  # (B, L, d_k)
        # accumulate the output projection per head (avoids lane concatenate)
        x1 = x1 + jnp.dot(oh.reshape(bl, d_k), wfc[lo:lo + d_k, :],
                          preferred_element_type=jnp.float32)

    # ---------------------------- FFN (fused gate/up, N=2I) ----------------------------
    x1hat = rms_normalize(x1)                                # ffn norm weight folded into W12
    w12 = w12s_ref[0:hidden, :]                              # (H, 2I)
    b12 = w12s_ref[hidden:hidden + 1, :]                     # (1, 2I)
    h12 = jnp.dot(x1hat, w12, preferred_element_type=jnp.float32) + b12    # (BL, 2I)
    gate = jax.nn.silu(h12[:, 0:inter])                      # linear1 -> silu
    h2 = h12[:, inter:2 * inter] * gate                      # linear2 * gate

    w3 = outs_ref[hidden:hidden + inter, :]                  # (I, H)
    b3 = outs_ref[hidden + inter + 1:hidden + inter + 2, :]  # (1, H)
    out = jnp.dot(h2, w3, preferred_element_type=jnp.float32) + b3 + x1    # dropout = id

    o_ref[...] = out.astype(o_ref.dtype)


# ------------------------- wrapper: pack params + call -------------------------
def pack_params(p):
    inv_sqrt_dk = 1.0 / math.sqrt(D_K)
    # Fold RMSNorm weights (diag scale on contraction dim) and the attention scale.
    wq = (p["qn"][0][:, None] * p["wq"]) * inv_sqrt_dk
    bq = p["bq"] * inv_sqrt_dk
    wk = p["kn"][0][:, None] * p["wk"]
    wv = p["vn"][0][:, None] * p["wv"]
    qkv_slab = jnp.concatenate(
        [jnp.concatenate([wq, wk, wv], axis=1),
         jnp.concatenate([bq, p["bk"], p["bv"]], axis=1)],
        axis=0)                                                       # (H+1, 3H)

    fn = p["fn"][0][:, None]
    w12_slab = jnp.concatenate(
        [jnp.concatenate([fn * p["w1"], fn * p["w2"]], axis=1),
         jnp.concatenate([p["b1"], p["b2"]], axis=1)],
        axis=0)                                                       # (H+1, 2I)

    out_slab = jnp.concatenate([p["wfc"], p["w3"], p["bfc"], p["b3"]],
                               axis=0)                                # (H+I+2, H)
    return qkv_slab, w12_slab, out_slab


def encoder_block(x, params):
    B, L, H = x.shape
    I = params["w1"].shape[1]

    qkv_slab, w12_slab, out_slab = pack_params(params)
    x2d = x.reshape(B * L, H)                                 # wrapper-side reshape (free)

    kern = functools.partial(
        encoder_block_kernel,
        batch=B, seq=L, hidden=H, inter=I,
        num_heads=NUM_HEADS, d_k=D_K, eps=EPS)

    def full(shape):
        # block == full array (allowed regardless of (8,128) divisibility)
        return pl.BlockSpec(shape, lambda i: (0, 0))

    out2d = pl.pallas_call(
        kern,
        out_shape=jax.ShapeDtypeStruct((B * L, H), x.dtype),
        grid_spec=pltpu.PrefetchScalarGridSpec(
            num_scalar_prefetch=0,
            grid=(1,),                                        # single step: overhead-bound regime
            in_specs=[
                full((B * L, H)),
                full(qkv_slab.shape),
                full(w12_slab.shape),
                full(out_slab.shape),
            ],
            out_specs=full((B * L, H)),
        ),
        compiler_params=pltpu.CompilerParams(
            dimension_semantics=("arbitrary",)),
    )(x2d, qkv_slab, w12_slab, out_slab)

    return out2d.reshape(B, L, H)


# ------------------------- pure-JAX reference ---------------------------------
def encoder_block_ref(x, p):
    def rmsnorm(v, w):
        rms = jnp.sqrt(jnp.mean(v * v, axis=-1, keepdims=True) + EPS)
        return v / rms * w[0]

    q = rmsnorm(x, p["qn"]) @ p["wq"] + p["bq"][0]
    k = rmsnorm(x, p["kn"]) @ p["wk"] + p["bk"][0]
    v = rmsnorm(x, p["vn"]) @ p["wv"] + p["bv"][0]
    B, L, H = x.shape
    qh = q.reshape(B, L, NUM_HEADS, D_K).transpose(0, 2, 1, 3)
    kh = k.reshape(B, L, NUM_HEADS, D_K).transpose(0, 2, 1, 3)
    vh = v.reshape(B, L, NUM_HEADS, D_K).transpose(0, 2, 1, 3)
    s = jnp.einsum("bhld,bhmd->bhlm", qh, kh) / math.sqrt(D_K)
    a = jax.nn.softmax(s, axis=-1) @ vh
    attn = a.transpose(0, 2, 1, 3).reshape(B, L, H)
    x1 = attn @ p["wfc"] + p["bfc"][0] + x
    xn = rmsnorm(x1, p["fn"])
    gate = jax.nn.silu(xn @ p["w1"] + p["b1"][0])
    h2 = (xn @ p["w2"] + p["b2"][0]) * gate
    h3 = h2 @ p["w3"] + p["b3"][0]
    return h3 + x1


# --------------------------------- main ---------------------------------------
if __name__ == "__main__":
    key = jax.random.PRNGKey(0)
    keys = jax.random.split(key, 20)

    def lin_w(k, fan_in, fan_out):
        bound = 1.0 / math.sqrt(fan_in)
        return jax.random.uniform(k, (fan_in, fan_out), jnp.float32, -bound, bound)

    def lin_b(k, fan_in, fan_out):
        bound = 1.0 / math.sqrt(fan_in)
        return jax.random.uniform(k, (1, fan_out), jnp.float32, -bound, bound)

    params = {
        # RMSNorm weights initialize to ones (as in the module)
        "qn": jnp.ones((1, HIDDEN), jnp.float32),
        "kn": jnp.ones((1, HIDDEN), jnp.float32),
        "vn": jnp.ones((1, HIDDEN), jnp.float32),
        "fn": jnp.ones((1, HIDDEN), jnp.float32),
        "wq": lin_w(keys[0], HIDDEN, HIDDEN), "bq": lin_b(keys[1], HIDDEN, HIDDEN),
        "wk": lin_w(keys[2], HIDDEN, HIDDEN), "bk": lin_b(keys[3], HIDDEN, HIDDEN),
        "wv": lin_w(keys[4], HIDDEN, HIDDEN), "bv": lin_b(keys[5], HIDDEN, HIDDEN),
        "wfc": lin_w(keys[6], HIDDEN, HIDDEN), "bfc": lin_b(keys[7], HIDDEN, HIDDEN),
        "w1": lin_w(keys[8], HIDDEN, INTER), "b1": lin_b(keys[9], HIDDEN, INTER),
        "w2": lin_w(keys[10], HIDDEN, INTER), "b2": lin_b(keys[11], HIDDEN, INTER),
        "w3": lin_w(keys[12], INTER, HIDDEN), "b3": lin_b(keys[13], INTER, HIDDEN),
    }

    x = jax.random.normal(keys[14], (BATCH, SEQ, HIDDEN), jnp.float32)

    out = encoder_block(x, params)
    out = jax.block_until_ready(out)

    ref = encoder_block_ref(x, params)
    assert out.shape == (BATCH, SEQ, HIDDEN)
    assert jnp.allclose(out, ref, atol=2e-4, rtol=2e-4), \
        f"max abs err {jnp.max(jnp.abs(out - ref))}"

    print("KERNEL_OK")
</pallas_src>

<mosaic_0001>
module attributes {stable_mosaic.version = 11 : i64} {
  func.func @encoder_block_kernel(%arg0: i32, %arg1: memref<16x32xf32, #tpu.memory_space<vmem>>, %arg2: memref<33x96xf32, #tpu.memory_space<vmem>>, %arg3: memref<33x128xf32, #tpu.memory_space<vmem>>, %arg4: memref<98x32xf32, #tpu.memory_space<vmem>>, %arg5: memref<16x32xf32, #tpu.memory_space<vmem>>) attributes {dimension_semantics = [#tpu.dimension_semantics<arbitrary>], iteration_bounds = array<i64: 1>, scalar_prefetch = 0 : i64, scratch_operands = 0 : i64, tpu.core_type = #tpu.core_type<tc>, window_params = [{pipeline_mode = #tpu.pipeline_mode<synchronous>, transform_indices = @transform_0, window_bounds = array<i64: 16, 32>}, {pipeline_mode = #tpu.pipeline_mode<synchronous>, transform_indices = @transform_1, window_bounds = array<i64: 33, 96>}, {pipeline_mode = #tpu.pipeline_mode<synchronous>, transform_indices = @transform_2, window_bounds = array<i64: 33, 128>}, {pipeline_mode = #tpu.pipeline_mode<synchronous>, transform_indices = @transform_3, window_bounds = array<i64: 98, 32>}, {pipeline_mode = #tpu.pipeline_mode<synchronous>, transform_indices = @transform_4, window_bounds = array<i64: 16, 32>}]} {
    %c0 = arith.constant 0 : index
    %c0_0 = arith.constant 0 : index
    %0 = vector.load %arg1[%c0, %c0_0] : memref<16x32xf32, #tpu.memory_space<vmem>>, vector<16x32xf32>
    %1 = arith.mulf %0, %0 : vector<16x32xf32>
    %cst = arith.constant dense<0.000000e+00> : vector<16xf32>
    %2 = vector.multi_reduction <add>, %1, %cst [1] : vector<16x32xf32> to vector<16xf32>
    %3 = vector.shape_cast %2 : vector<16xf32> to vector<16x1xf32>
    %cst_1 = arith.constant 3.200000e+01 : f32
    %4 = vector.broadcast %cst_1 : f32 to vector<16x1xf32>
    %5 = arith.divf %3, %4 : vector<16x1xf32>
    %cst_2 = arith.constant 9.99999997E-7 : f32
    %6 = vector.broadcast %cst_2 : f32 to vector<16x1xf32>
    %7 = arith.addf %5, %6 : vector<16x1xf32>
    %8 = math.rsqrt %7 : vector<16x1xf32>
    %9 = vector.broadcast %8 : vector<16x1xf32> to vector<16x32xf32>
    %10 = arith.mulf %0, %9 : vector<16x32xf32>
    %c0_3 = arith.constant 0 : index
    %c0_4 = arith.constant 0 : index
    %11 = vector.load %arg2[%c0_3, %c0_4] : memref<33x96xf32, #tpu.memory_space<vmem>>, vector<32x96xf32>
    %c32 = arith.constant 32 : index
    %c0_5 = arith.constant 0 : index
    %12 = vector.load %arg2[%c32, %c0_5] : memref<33x96xf32, #tpu.memory_space<vmem>>, vector<1x96xf32>
    %cst_6 = arith.constant dense<0.000000e+00> : vector<16x96xf32>
    %13 = tpu.matmul %10, %11, %cst_6 {dimension_numbers = #tpu.dot_dimension_numbers<[1], [0], [0], [1], [0, 0, 1, 1], [], []>} : vector<16x32xf32>, vector<32x96xf32>, vector<16x96xf32> -> vector<16x96xf32>
    %14 = vector.broadcast %12 : vector<1x96xf32> to vector<16x96xf32>
    %15 = arith.addf %13, %14 : vector<16x96xf32>
    %16 = vector.extract_strided_slice %15 {offsets = [0, 0], sizes = [16, 32], strides = [1, 1]} : vector<16x96xf32> to vector<16x32xf32>
    %17 = vector.shape_cast %16 : vector<16x32xf32> to vector<2x8x32xf32>
    %18 = vector.extract_strided_slice %15 {offsets = [0, 32], sizes = [16, 32], strides = [1, 1]} : vector<16x96xf32> to vector<16x32xf32>
    %19 = vector.shape_cast %18 : vector<16x32xf32> to vector<2x8x32xf32>
    %20 = vector.extract_strided_slice %15 {offsets = [0, 64], sizes = [16, 32], strides = [1, 1]} : vector<16x96xf32> to vector<16x32xf32>
    %21 = vector.shape_cast %20 : vector<16x32xf32> to vector<2x8x32xf32>
    %c0_7 = arith.constant 0 : index
    %c0_8 = arith.constant 0 : index
    %22 = vector.load %arg4[%c0_7, %c0_8] : memref<98x32xf32, #tpu.memory_space<vmem>>, vector<32x32xf32>
    %c96 = arith.constant 96 : index
    %c0_9 = arith.constant 0 : index
    %23 = vector.load %arg4[%c96, %c0_9] : memref<98x32xf32, #tpu.memory_space<vmem>>, vector<1x32xf32>
    %24 = vector.broadcast %23 : vector<1x32xf32> to vector<16x32xf32>
    %25 = arith.addf %0, %24 : vector<16x32xf32>
    %26 = vector.extract_strided_slice %17 {offsets = [0, 0, 0], sizes = [2, 8, 8], strides = [1, 1, 1]} : vector<2x8x32xf32> to vector<2x8x8xf32>
    %27 = vector.extract_strided_slice %19 {offsets = [0, 0, 0], sizes = [2, 8, 8], strides = [1, 1, 1]} : vector<2x8x32xf32> to vector<2x8x8xf32>
    %28 = vector.extract_strided_slice %21 {offsets = [0, 0, 0], sizes = [2, 8, 8], strides = [1, 1, 1]} : vector<2x8x32xf32> to vector<2x8x8xf32>
    "tpu.trace_start"() <{level = 10 : i32, message = "bld,bmd->blm"}> : () -> ()
    %cst_10 = arith.constant dense<0.000000e+00> : vector<2x8x8xf32>
    %29 = tpu.matmul %26, %27, %cst_10 {dimension_numbers = #tpu.dot_dimension_numbers<[2], [2], [1], [1], [0, 0, 0, 1, 1, 1], [0], [0]>} : vector<2x8x8xf32>, vector<2x8x8xf32>, vector<2x8x8xf32> -> vector<2x8x8xf32>
    "tpu.trace_stop"() : () -> ()
    %cst_11 = arith.constant dense<0xFF800000> : vector<2x8xf32>
    %30 = vector.multi_reduction <maximumf>, %29, %cst_11 [2] : vector<2x8x8xf32> to vector<2x8xf32>
    %cst_12 = arith.constant 0xFF800000 : f32
    %31 = vector.broadcast %cst_12 : f32 to vector<2x8xf32>
    %32 = arith.maximumf %31, %30 : vector<2x8xf32>
    %33 = vector.shape_cast %32 : vector<2x8xf32> to vector<2x8x1xf32>
    %34 = vector.broadcast %33 : vector<2x8x1xf32> to vector<2x8x8xf32>
    %35 = arith.subf %29, %34 : vector<2x8x8xf32>
    %36 = math.exp %35 : vector<2x8x8xf32>
    %cst_13 = arith.constant dense<0.000000e+00> : vector<2x8xf32>
    %37 = vector.multi_reduction <add>, %36, %cst_13 [2] : vector<2x8x8xf32> to vector<2x8xf32>
    %38 = vector.shape_cast %37 : vector<2x8xf32> to vector<2x8x1xf32>
    %39 = vector.broadcast %38 : vector<2x8x1xf32> to vector<2x8x8xf32>
    %40 = arith.divf %36, %39 : vector<2x8x8xf32>
    "tpu.trace_start"() <{level = 10 : i32, message = "blm,bmd->bld"}> : () -> ()
    %cst_14 = arith.constant dense<0.000000e+00> : vector<2x8x8xf32>
    %41 = tpu.matmul %40, %28, %cst_14 {dimension_numbers = #tpu.dot_dimension_numbers<[2], [1], [1], [2], [0, 0, 0, 1, 1, 2], [0], [0]>} : vector<2x8x8xf32>, vector<2x8x8xf32>, vector<2x8x8xf32> -> vector<2x8x8xf32>
    "tpu.trace_stop"() : () -> ()
    %42 = vector.shape_cast %41 : vector<2x8x8xf32> to vector<16x8xf32>
    %43 = vector.extract_strided_slice %22 {offsets = [0, 0], sizes = [8, 32], strides = [1, 1]} : vector<32x32xf32> to vector<8x32xf32>
    %cst_15 = arith.constant dense<0.000000e+00> : vector<16x32xf32>
    %44 = tpu.matmul %42, %43, %cst_15 {dimension_numbers = #tpu.dot_dimension_numbers<[1], [0], [0], [1], [0, 0, 1, 1], [], []>} : vector<16x8xf32>, vector<8x32xf32>, vector<16x32xf32> -> vector<16x32xf32>
    %45 = arith.addf %25, %44 : vector<16x32xf32>
    %46 = vector.extract_strided_slice %17 {offsets = [0, 0, 8], sizes = [2, 8, 8], strides = [1, 1, 1]} : vector<2x8x32xf32> to vector<2x8x8xf32>
    %47 = vector.extract_strided_slice %19 {offsets = [0, 0, 8], sizes = [2, 8, 8], strides = [1, 1, 1]} : vector<2x8x32xf32> to vector<2x8x8xf32>
    %48 = vector.extract_strided_slice %21 {offsets = [0, 0, 8], sizes = [2, 8, 8], strides = [1, 1, 1]} : vector<2x8x32xf32> to vector<2x8x8xf32>
    "tpu.trace_start"() <{level = 10 : i32, message = "bld,bmd->blm"}> : () -> ()
    %cst_16 = arith.constant dense<0.000000e+00> : vector<2x8x8xf32>
    %49 = tpu.matmul %46, %47, %cst_16 {dimension_numbers = #tpu.dot_dimension_numbers<[2], [2], [1], [1], [0, 0, 0, 1, 1, 1], [0], [0]>} : vector<2x8x8xf32>, vector<2x8x8xf32>, vector<2x8x8xf32> -> vector<2x8x8xf32>
    "tpu.trace_stop"() : () -> ()
    %cst_17 = arith.constant dense<0xFF800000> : vector<2x8xf32>
    %50 = vector.multi_reduction <maximumf>, %49, %cst_17 [2] : vector<2x8x8xf32> to vector<2x8xf32>
    %cst_18 = arith.constant 0xFF800000 : f32
    %51 = vector.broadcast %cst_18 : f32 to vector<2x8xf32>
    %52 = arith.maximumf %51, %50 : vector<2x8xf32>
    %53 = vector.shape_cast %52 : vector<2x8xf32> to vector<2x8x1xf32>
    %54 = vector.broadcast %53 : vector<2x8x1xf32> to vector<2x8x8xf32>
    %55 = arith.subf %49, %54 : vector<2x8x8xf32>
    %56 = math.exp %55 : vector<2x8x8xf32>
    %cst_19 = arith.constant dense<0.000000e+00> : vector<2x8xf32>
    %57 = vector.multi_reduction <add>, %56, %cst_19 [2] : vector<2x8x8xf32> to vector<2x8xf32>
    %58 = vector.shape_cast %57 : vector<2x8xf32> to vector<2x8x1xf32>
    %59 = vector.broadcast %58 : vector<2x8x1xf32> to vector<2x8x8xf32>
    %60 = arith.divf %56, %59 : vector<2x8x8xf32>
    "tpu.trace_start"() <{level = 10 : i32, message = "blm,bmd->bld"}> : () -> ()
    %cst_20 = arith.constant dense<0.000000e+00> : vector<2x8x8xf32>
    %61 = tpu.matmul %60, %48, %cst_20 {dimension_numbers = #tpu.dot_dimension_numbers<[2], [1], [1], [2], [0, 0, 0, 1, 1, 2], [0], [0]>} : vector<2x8x8xf32>, vector<2x8x8xf32>, vector<2x8x8xf32> -> vector<2x8x8xf32>
    "tpu.trace_stop"() : () -> ()
    %62 = vector.shape_cast %61 : vector<2x8x8xf32> to vector<16x8xf32>
    %63 = vector.extract_strided_slice %22 {offsets = [8, 0], sizes = [8, 32], strides = [1, 1]} : vector<32x32xf32> to vector<8x32xf32>
    %cst_21 = arith.constant dense<0.000000e+00> : vector<16x32xf32>
    %64 = tpu.matmul %62, %63, %cst_21 {dimension_numbers = #tpu.dot_dimension_numbers<[1], [0], [0], [1], [0, 0, 1, 1], [], []>} : vector<16x8xf32>, vector<8x32xf32>, vector<16x32xf32> -> vector<16x32xf32>
    %65 = arith.addf %45, %64 : vector<16x32xf32>
    %66 = vector.extract_strided_slice %17 {offsets = [0, 0, 16], sizes = [2, 8, 8], strides = [1, 1, 1]} : vector<2x8x32xf32> to vector<2x8x8xf32>
    %67 = vector.extract_strided_slice %19 {offsets = [0, 0, 16], sizes = [2, 8, 8], strides = [1, 1, 1]} : vector<2x8x32xf32> to vector<2x8x8xf32>
    %68 = vector.extract_strided_slice %21 {offsets = [0, 0, 16], sizes = [2, 8, 8], strides = [1, 1, 1]} : vector<2x8x32xf32> to vector<2x8x8xf32>
    "tpu.trace_start"() <{level = 10 : i32, message = "bld,bmd->blm"}> : () -> ()
    %cst_22 = arith.constant dense<0.000000e+00> : vector<2x8x8xf32>
    %69 = tpu.matmul %66, %67, %cst_22 {dimension_numbers = #tpu.dot_dimension_numbers<[2], [2], [1], [1], [0, 0, 0, 1, 1, 1], [0], [0]>} : vector<2x8x8xf32>, vector<2x8x8xf32>, vector<2x8x8xf32> -> vector<2x8x8xf32>
    "tpu.trace_stop"() : () -> ()
    %cst_23 = arith.constant dense<0xFF800000> : vector<2x8xf32>
    %70 = vector.multi_reduction <maximumf>, %69, %cst_23 [2] : vector<2x8x8xf32> to vector<2x8xf32>
    %cst_24 = arith.constant 0xFF800000 : f32
    %71 = vector.broadcast %cst_24 : f32 to vector<2x8xf32>
    %72 = arith.maximumf %71, %70 : vector<2x8xf32>
    %73 = vector.shape_cast %72 : vector<2x8xf32> to vector<2x8x1xf32>
    %74 = vector.broadcast %73 : vector<2x8x1xf32> to vector<2x8x8xf32>
    %75 = arith.subf %69, %74 : vector<2x8x8xf32>
    %76 = math.exp %75 : vector<2x8x8xf32>
    %cst_25 = arith.constant dense<0.000000e+00> : vector<2x8xf32>
    %77 = vector.multi_reduction <add>, %76, %cst_25 [2] : vector<2x8x8xf32> to vector<2x8xf32>
    %78 = vector.shape_cast %77 : vector<2x8xf32> to vector<2x8x1xf32>
    %79 = vector.broadcast %78 : vector<2x8x1xf32> to vector<2x8x8xf32>
    %80 = arith.divf %76, %79 : vector<2x8x8xf32>
    "tpu.trace_start"() <{level = 10 : i32, message = "blm,bmd->bld"}> : () -> ()
    %cst_26 = arith.constant dense<0.000000e+00> : vector<2x8x8xf32>
    %81 = tpu.matmul %80, %68, %cst_26 {dimension_numbers = #tpu.dot_dimension_numbers<[2], [1], [1], [2], [0, 0, 0, 1, 1, 2], [0], [0]>} : vector<2x8x8xf32>, vector<2x8x8xf32>, vector<2x8x8xf32> -> vector<2x8x8xf32>
    "tpu.trace_stop"() : () -> ()
    %82 = vector.shape_cast %81 : vector<2x8x8xf32> to vector<16x8xf32>
    %83 = vector.extract_strided_slice %22 {offsets = [16, 0], sizes = [8, 32], strides = [1, 1]} : vector<32x32xf32> to vector<8x32xf32>
    %cst_27 = arith.constant dense<0.000000e+00> : vector<16x32xf32>
    %84 = tpu.matmul %82, %83, %cst_27 {dimension_numbers = #tpu.dot_dimension_numbers<[1], [0], [0], [1], [0, 0, 1, 1], [], []>} : vector<16x8xf32>, vector<8x32xf32>, vector<16x32xf32> -> vector<16x32xf32>
    %85 = arith.addf %65, %84 : vector<16x32xf32>
    %86 = vector.extract_strided_slice %17 {offsets = [0, 0, 24], sizes = [2, 8, 8], strides = [1, 1, 1]} : vector<2x8x32xf32> to vector<2x8x8xf32>
    %87 = vector.extract_strided_slice %19 {offsets = [0, 0, 24], sizes = [2, 8, 8], strides = [1, 1, 1]} : vector<2x8x32xf32> to vector<2x8x8xf32>
    %88 = vector.extract_strided_slice %21 {offsets = [0, 0, 24], sizes = [2, 8, 8], strides = [1, 1, 1]} : vector<2x8x32xf32> to vector<2x8x8xf32>
    "tpu.trace_start"() <{level = 10 : i32, message = "bld,bmd->blm"}> : () -> ()
    %cst_28 = arith.constant dense<0.000000e+00> : vector<2x8x8xf32>
    %89 = tpu.matmul %86, %87, %cst_28 {dimension_numbers = #tpu.dot_dimension_numbers<[2], [2], [1], [1], [0, 0, 0, 1, 1, 1], [0], [0]>} : vector<2x8x8xf32>, vector<2x8x8xf32>, vector<2x8x8xf32> -> vector<2x8x8xf32>
    "tpu.trace_stop"() : () -> ()
    %cst_29 = arith.constant dense<0xFF800000> : vector<2x8xf32>
    %90 = vector.multi_reduction <maximumf>, %89, %cst_29 [2] : vector<2x8x8xf32> to vector<2x8xf32>
    %cst_30 = arith.constant 0xFF800000 : f32
    %91 = vector.broadcast %cst_30 : f32 to vector<2x8xf32>
    %92 = arith.maximumf %91, %90 : vector<2x8xf32>
    %93 = vector.shape_cast %92 : vector<2x8xf32> to vector<2x8x1xf32>
    %94 = vector.broadcast %93 : vector<2x8x1xf32> to vector<2x8x8xf32>
    %95 = arith.subf %89, %94 : vector<2x8x8xf32>
    %96 = math.exp %95 : vector<2x8x8xf32>
    %cst_31 = arith.constant dense<0.000000e+00> : vector<2x8xf32>
    %97 = vector.multi_reduction <add>, %96, %cst_31 [2] : vector<2x8x8xf32> to vector<2x8xf32>
    %98 = vector.shape_cast %97 : vector<2x8xf32> to vector<2x8x1xf32>
    %99 = vector.broadcast %98 : vector<2x8x1xf32> to vector<2x8x8xf32>
    %100 = arith.divf %96, %99 : vector<2x8x8xf32>
    "tpu.trace_start"() <{level = 10 : i32, message = "blm,bmd->bld"}> : () -> ()
    %cst_32 = arith.constant dense<0.000000e+00> : vector<2x8x8xf32>
    %101 = tpu.matmul %100, %88, %cst_32 {dimension_numbers = #tpu.dot_dimension_numbers<[2], [1], [1], [2], [0, 0, 0, 1, 1, 2], [0], [0]>} : vector<2x8x8xf32>, vector<2x8x8xf32>, vector<2x8x8xf32> -> vector<2x8x8xf32>
    "tpu.trace_stop"() : () -> ()
    %102 = vector.shape_cast %101 : vector<2x8x8xf32> to vector<16x8xf32>
    %103 = vector.extract_strided_slice %22 {offsets = [24, 0], sizes = [8, 32], strides = [1, 1]} : vector<32x32xf32> to vector<8x32xf32>
    %cst_33 = arith.constant dense<0.000000e+00> : vector<16x32xf32>
    %104 = tpu.matmul %102, %103, %cst_33 {dimension_numbers = #tpu.dot_dimension_numbers<[1], [0], [0], [1], [0, 0, 1, 1], [], []>} : vector<16x8xf32>, vector<8x32xf32>, vector<16x32xf32> -> vector<16x32xf32>
    %105 = arith.addf %85, %104 : vector<16x32xf32>
    %106 = arith.mulf %105, %105 : vector<16x32xf32>
    %cst_34 = arith.constant dense<0.000000e+00> : vector<16xf32>
    %107 = vector.multi_reduction <add>, %106, %cst_34 [1] : vector<16x32xf32> to vector<16xf32>
    %108 = vector.shape_cast %107 : vector<16xf32> to vector<16x1xf32>
    %cst_35 = arith.constant 3.200000e+01 : f32
    %109 = vector.broadcast %cst_35 : f32 to vector<16x1xf32>
    %110 = arith.divf %108, %109 : vector<16x1xf32>
    %cst_36 = arith.constant 9.99999997E-7 : f32
    %111 = vector.broadcast %cst_36 : f32 to vector<16x1xf32>
    %112 = arith.addf %110, %111 : vector<16x1xf32>
    %113 = math.rsqrt %112 : vector<16x1xf32>
    %114 = vector.broadcast %113 : vector<16x1xf32> to vector<16x32xf32>
    %115 = arith.mulf %105, %114 : vector<16x32xf32>
    %c0_37 = arith.constant 0 : index
    %c0_38 = arith.constant 0 : index
    %116 = vector.load %arg3[%c0_37, %c0_38] : memref<33x128xf32, #tpu.memory_space<vmem>>, vector<32x128xf32>
    %c32_39 = arith.constant 32 : index
    %c0_40 = arith.constant 0 : index
    %117 = vector.load %arg3[%c32_39, %c0_40] : memref<33x128xf32, #tpu.memory_space<vmem>>, vector<1x128xf32>
    %cst_41 = arith.constant dense<0.000000e+00> : vector<16x128xf32>
    %118 = tpu.matmul %115, %116, %cst_41 {dimension_numbers = #tpu.dot_dimension_numbers<[1], [0], [0], [1], [0, 0, 1, 1], [], []>} : vector<16x32xf32>, vector<32x128xf32>, vector<16x128xf32> -> vector<16x128xf32>
    %119 = vector.broadcast %117 : vector<1x128xf32> to vector<16x128xf32>
    %120 = arith.addf %118, %119 : vector<16x128xf32>
    %121 = vector.extract_strided_slice %120 {offsets = [0, 0], sizes = [16, 64], strides = [1, 1]} : vector<16x128xf32> to vector<16x64xf32>
    %122 = arith.negf %121 : vector<16x64xf32>
    %123 = math.exp %122 : vector<16x64xf32>
    %cst_42 = arith.constant 1.000000e+00 : f32
    %124 = vector.broadcast %cst_42 : f32 to vector<16x64xf32>
    %125 = arith.addf %124, %123 : vector<16x64xf32>
    %126 = arith.divf %124, %125 : vector<16x64xf32>
    %127 = arith.mulf %121, %126 : vector<16x64xf32>
    %128 = vector.extract_strided_slice %120 {offsets = [0, 64], sizes = [16, 64], strides = [1, 1]} : vector<16x128xf32> to vector<16x64xf32>
    %129 = arith.mulf %128, %127 : vector<16x64xf32>
    %c32_43 = arith.constant 32 : index
    %c0_44 = arith.constant 0 : index
    %130 = vector.load %arg4[%c32_43, %c0_44] : memref<98x32xf32, #tpu.memory_space<vmem>>, vector<64x32xf32>
    %c97 = arith.constant 97 : index
    %c0_45 = arith.constant 0 : index
    %131 = vector.load %arg4[%c97, %c0_45] : memref<98x32xf32, #tpu.memory_space<vmem>>, vector<1x32xf32>
    %cst_46 = arith.constant dense<0.000000e+00> : vector<16x32xf32>
    %132 = tpu.matmul %129, %130, %cst_46 {dimension_numbers = #tpu.dot_dimension_numbers<[1], [0], [0], [1], [0, 0, 1, 1], [], []>} : vector<16x64xf32>, vector<64x32xf32>, vector<16x32xf32> -> vector<16x32xf32>
    %133 = vector.broadcast %131 : vector<1x32xf32> to vector<16x32xf32>
    %134 = arith.addf %132, %133 : vector<16x32xf32>
    %135 = arith.addf %134, %105 : vector<16x32xf32>
    %c0_47 = arith.constant 0 : index
    %c0_48 = arith.constant 0 : index
    %136 = vector.load %arg5[%c0_47, %c0_48] : memref<16x32xf32, #tpu.memory_space<vmem>>, vector<16x32xf32>
    tpu.vector_store %arg5[%c0_47, %c0_48], %135 {strides = array<i32>} : memref<16x32xf32, #tpu.memory_space<vmem>>, vector<16x32xf32>,
    return
  }
  func.func @transform_0(%arg0: i32) -> (i32, i32) {
    %c0_i32 = arith.constant 0 : i32
    %c0_i32_0 = arith.constant 0 : i32
    %c0_i32_1 = arith.constant 0 : i32
    return %c0_i32, %c0_i32_0 : i32, i32
  }
  func.func @transform_1(%arg0: i32) -> (i32, i32) {
    %c0_i32 = arith.constant 0 : i32
    %c0_i32_0 = arith.constant 0 : i32
    %c0_i32_1 = arith.constant 0 : i32
    return %c0_i32, %c0_i32_0 : i32, i32
  }
  func.func @transform_2(%arg0: i32) -> (i32, i32) {
    %c0_i32 = arith.constant 0 : i32
    %c0_i32_0 = arith.constant 0 : i32
    %c0_i32_1 = arith.constant 0 : i32
    return %c0_i32, %c0_i32_0 : i32, i32
  }
  func.func @transform_3(%arg0: i32) -> (i32, i32) {
    %c0_i32 = arith.constant 0 : i32
    %c0_i32_0 = arith.constant 0 : i32
    %c0_i32_1 = arith.constant 0 : i32
    return %c0_i32, %c0_i32_0 : i32, i32
  }
  func.func @transform_4(%arg0: i32) -> (i32, i32) {
    %c0_i32 = arith.constant 0 : i32
    %c0_i32_0 = arith.constant 0 : i32
    %c0_i32_1 = arith.constant 0 : i32
    return %c0_i32, %c0_i32_0 : i32, i32
  }
}

</mosaic_0001>

<bundles_post_ra>
// kernel: tpu_custom_call.1
= control target key start
LH: loop header
LB: loop body
LE: loop exit
PB: predicated region body
PF: predicated region fallthrough
CT: control target
= control target key end

     0   :  { %vm22_vm0 = vcmask 261120   ;;  %s2721_s0 = inlined_call_operand.vmem [shape: f32[16,32], index: 0, kind: input, shape index: {}]   ;;  %s2722_s1 = inlined_call_operand.vmem [shape: f32[33,96], index: 1, kind: input, shape index: {}]   ;;  %s2723_s2 = inlined_call_operand.vmem [shape: f32[33,128], index: 2, kind: input, shape index: {}]   ;;  %s2724_s3 = inlined_call_operand.vmem [shape: f32[98,32], index: 3, kind: input, shape index: {}]   ;;  %s2725_s4 = inlined_call_operand.hbm [shape: f32[16,32], index: 4, kind: output, shape index: {}]  }
   0x1   :  { %v2462_v0 = vld [vmem:[%s2721_s0] sm:$0xff]  ;;  %v2467_v1 = vld [vmem:[%s2721_s0 + $0x8] sm:$0xff] }
   0x2   :  { %9 = vsyncpa [#allocation3], 0  ;;  %v20_v2 = vmul.f32 %v2462_v0, %v2462_v0  ;;  %v21_v3 = vmul.f32 %v2467_v1, %v2467_v1  ;;  %v38_v6 = vld [vmem:[%s2722_s1] sm:$0xff]  ;;  %v39_v7 = vld [vmem:[%s2722_s1 + $0x8] sm:$0xff]  ;;  %v2418_v22 = vmov 0.0   ;;  %vm2419_vm1 = vmmov 0  }
   0x3   :  { %v40_v8 = vld [vmem:[%s2722_s1 + $0x10] sm:$0xff]  ;;  %v2290_v9 = vpack.c.bf16 %v39_v7, %v38_v6  ;;  %v41_v10 = vld [vmem:[%s2722_s1 + $0x18] sm:$0xff]  ;;  %2170 = vmatprep.subr.mxu0 %v2418_v22  ;;  %2172 = vmatprep.mubr.msk.f32.mxu0 %vm2419_vm1, %v2418_v22  ;;  %v2039_v23 = vld [vmem:[%s2722_s1 + $0x20] ss:$0 sm:$0xff]  ;;  %s2420_s28 = smov 96   ;;  %vm142_vm2 = vcmask 64512  }
   0x4   :  { %v23_v4 = vsel %vm22_vm0, %v20_v2, 0.0  ;;  %v26_v5 = vsel %vm22_vm0, %v21_v3, 0.0  ;;  %v2294_v11 = vpack.c.bf16 %v41_v10, %v40_v8  ;;  %s2421_s1 = smov 88   ;;  %s2422_s29 = smov 64   ;;  %v128_v47 = vld [vmem:[%s2724_s3] sm:$0xff]  ;;  %vm1939_vm3 = vcmask 523264  }
   0x5   :  { %24 = vadd.xlane.f32.xlu0 %v23_v4  ;;  %2291 = vmatprep.subr.bf16.mxu1 %v2290_v9  ;;  %s2423_s30 = smov 80   ;;  %s2424_s5 = smov 120  }
   0x6   :  { %2293 = vmatpush3.bf16.msra.mxu1 %v2290_v9  ;;  %s2425_s8 = smov 56   ;;  %s2426_s9 = smov 112  }
   0x7   :  { %2295 = vmatprep.subr.bf16.mxu1 %v2294_v11  ;;  %s2427_s10 = smov 48   ;;  %s2428_s11 = smov 72  }
   0x8   :  { %s2429_s12 = smov 104   ;;  %s2430_s17 = smov 40  }
   0x9   :  { %27 = vadd.xlane.f32.xlu0 %v26_v5  ;;  %s2431_s0 = smov [#allocation2]  }
   0xa   :  { %2297 = vmatpush3.bf16.msra.mxu1 %v2294_v11  ;;  %s2028_s22 = sshll.u32 %s2431_s0, 4  ;;  %s2029_s22 = int_to_ptr.vmem [resolvable:$true] %s2028_s22 }
   0xb   :  { %2160 = vmatprep.subr.mxu1 %v2418_v22  ;;  %p2399_p1 = scmp.lt.s32.totalorder %s2029_s22, %s2029_s22 }
  0x92   :  { %v25_v12 = vpop.xlane.xlu0 %24 }
  0x93   :  { %v30_v13 = vmul.f32 0.03125, %v25_v12 }
  0x95   :  { %v32_v14 = vadd.f32 1e-06, %v30_v13 }
  0x96   :  { %v28_v15 = vpop.xlane.xlu0 %27 }
  0x97   :  { %2346 = vrsqrt.f32 %v32_v14  ;;  %v31_v16 = vmul.f32 0.03125, %v28_v15 }
  0x99   :  { %v33_v17 = vadd.f32 1e-06, %v31_v16 }
  0x9b   :  { %2348 = vrsqrt.f32 %v33_v17 }
  0xa1   :  { %v2347_v18 = vpop.eup %2346 }
  0xa2   :  { %v36_v19 = vmul.f32 %v2347_v18, %v2462_v0 }
  0xa4   :  { %2157 = vmatprep.mubr.msk.f32.mxu1 %vm22_vm0, %v36_v19 }
  0xa5   :  { %v2349_v20 = vpop.eup %2348 }
  0xa6   :  { %v37_v21 = vmul.f32 %v2349_v20, %v2467_v1 }
  0xa8   :  { %2158 = vmatmul.mubr.msk.f32.vlgmr.msra.gmra.mrb[0].mxu1 %vm22_vm0, %v37_v21 }
  0xa9   :  { %2162 = vmatprep.mubr.msk.f32.mxu1 %vm2419_vm1, %v2418_v22 }
 0x17b   :  { %v2159_v24 = vpop.f32.mrb[0].mxu1 }
 0x17c   :  { %v119_v25 = vpop.f32.mrb[1].mxu1  ;;  %v2503_v27 = vadd.f32 %v2159_v24, %v2039_v23 }
 0x17d   :  { %v2500_v26 = vadd.f32 %v2039_v23, %v119_v25 }
 0x17f   :  { %140 = vrot.lane.b32.xlu1 %v2500_v26, %s2420_s28 }
 0x183   :  { %218 = vrot.lane.b32.xlu1 %v2503_v27, %s2420_s28 }
 0x1f1   :  { %v141_v28 = vpop.permute.xlu1 %140 }
 0x1f2   :  { %2161 = vmatpush3.xpose.msk.msra.mxu1 %vm142_vm2, %v141_v28 }
 0x1f3   :  { %2165 = vmatprep.subr.mxu1 %v2418_v22 }
 0x1f5   :  { %2163 = vmatmul.mubr.msk.f32.vlgmr.msra.gmra.mrb[2].mxu1 %vm142_vm2, %v2500_v26  ;;  %v219_v29 = vpop.permute.xlu1 %218 }
 0x1f6   :  { %2166 = vmatpush3.xpose.msk.msra.mxu1 %vm142_vm2, %v219_v29  ;;  %2167 = vmatprep.mubr.msk.f32.mxu1 %vm2419_vm1, %v2418_v22 }
 0x1f7   :  { %2175 = vmatprep.subr.mxu1 %v2418_v22 }
 0x1f9   :  { %2168 = vmatmul.mubr.msk.f32.vlgmr.msra.gmra.mrb[4].mxu1 %vm142_vm2, %v2503_v27 }
 0x1fa   :  { %2177 = vmatprep.mubr.msk.f32.mxu1 %vm2419_vm1, %v2418_v22 }
 0x2c8   :  { %v213_v30 = vpop.f32.mrb[2].mxu1 }
 0x2c9   :  { %v2164_v31 = vpop.f32.mrb[3].mxu1  ;;  %v294_v32 = vsel %vm142_vm2, %v213_v30, -inf }
 0x2ca   :  { %295 = vmax.xlane.f32.xlu0 %v294_v32 }
 0x2cc   :  { %v290_v33 = vpop.f32.mrb[4].mxu1 }
 0x2cd   :  { %v2169_v34 = vpop.f32.mrb[5].mxu1  ;;  %v297_v35 = vsel %vm142_vm2, %v290_v33, -inf }
 0x2ce   :  { %298 = vmax.xlane.f32.xlu1 %v297_v35 }
 0x2df   :  { %553 = vrot.lane.b32.xlu1 %v2500_v26, %s2421_s1 }
 0x2e0   :  { %316 = vrot.lane.b32.xlu0 %v2500_v26, %s2422_s29 }
 0x2e3   :  { %966 = vrot.lane.b32.xlu1 %v2500_v26, %s2423_s30 }
 0x357   :  { %v296_v36 = vpop.xlane.xlu0 %295 }
 0x358   :  { %v300_v37 = vsub.f32 %v213_v30, %v296_v36 }
 0x35a   :  { %v302_v38 = vmul.f32 1.442695, %v300_v37 }
 0x35b   :  { %v317_v39 = vpop.permute.xlu0 %316  ;;  %v299_v40 = vpop.xlane.xlu1 %298 }
 0x35c   :  { %2350 = vpow2.f32 %v302_v38  ;;  %v301_v41 = vsub.f32 %v290_v33, %v299_v40  ;;  %2171 = vmatpush3.msra.mxu0 %v317_v39 }
 0x35d   :  { %2180 = vmatprep.subr.mxu0 %v128_v47 }
 0x35e   :  { %v304_v42 = vmul.f32 1.442695, %v301_v41  ;;  %v129_v41 = vld [vmem:[%s2724_s3 + $0x8] sm:$0xff] }
 0x35f   :  { %v554_v55 = vpop.permute.xlu1 %553 }
 0x360   :  { %2352 = vpow2.f32 %v304_v42 }
 0x363   :  { %v967_v13 = vpop.permute.xlu1 %966 }
 0x366   :  { %v2351_v43 = vpop.eup %2350 }
 0x367   :  { %v306_v44 = vsel %vm142_vm2, %v2351_v43, 0.0 }
 0x368   :  { %307 = vadd.xlane.f32.xlu0 %v306_v44 }
 0x36a   :  { %v2353_v45 = vpop.eup %2352 }
 0x36b   :  { %v309_v46 = vsel %vm142_vm2, %v2353_v45, 0.0 }
 0x36c   :  { %310 = vadd.xlane.f32.xlu0 %v309_v46 }
 0x382   :  { %392 = vrot.lane.b32.xlu0 %v2503_v27, %s2422_s29 }
 0x386   :  { %551 = vrot.lane.b32.xlu0 %v2500_v26, %s2424_s5 }
 0x38a   :  { %631 = vrot.lane.b32.xlu0 %v2503_v27, %s2421_s1 }
 0x38e   :  { %629 = vrot.lane.b32.xlu0 %v2503_v27, %s2424_s5 }
 0x3f5   :  { %v308_v48 = vpop.xlane.xlu0 %307 }
 0x3f6   :  { %2354 = vrcp.f32 %v308_v48 }
 0x3f9   :  { %v311_v49 = vpop.xlane.xlu0 %310 }
 0x3fa   :  { %2356 = vrcp.f32 %v311_v49 }
 0x3fd   :  { %v393_v50 = vpop.permute.xlu0 %392 }
 0x3fe   :  { %2176 = vmatpush3.msra.mxu1 %v393_v50 }
 0x3ff   :  { %2185 = vmatprep.subr.mxu1 %v2418_v22 }
 0x400   :  { %v2355_v51 = vpop.eup %2354 }
 0x401   :  { %v313_v52 = vmul.f32 %v2355_v51, %v2351_v43  ;;  %v552_v56 = vpop.permute.xlu0 %551 }
 0x403   :  { %2173 = vmatmul.mubr.msk.f32.vlgmr.msra.gmra.mrb[0].mxu0 %vm142_vm2, %v313_v52 }
 0x404   :  { %v2357_v53 = vpop.eup %2356  ;;  %2181 = vmatpush3.msra.mxu0 %v128_v47 }
 0x405   :  { %v315_v54 = vmul.f32 %v2357_v53, %v2353_v45  ;;  %2190 = vmatprep.subr.mxu0 %v2418_v22  ;;  %v632_v59 = vpop.permute.xlu0 %631 }
 0x407   :  { %2178 = vmatmul.mubr.msk.f32.vlgmr.msra.gmra.mrb[6].mxu1 %vm142_vm2, %v315_v54 }
 0x408   :  { %2186 = vmatpush3.xpose.msk.msra.mxu1 %vm142_vm2, %v554_v55  ;;  %2187 = vmatprep.mubr.msk.f32.mxu1 %vm2419_vm1, %v2418_v22 }
 0x409   :  { %2195 = vmatprep.subr.mxu1 %v2418_v22  ;;  %v630_v62 = vpop.permute.xlu0 %629 }
 0x40b   :  { %2188 = vmatmul.mubr.msk.f32.vlgmr.msra.gmra.mrb[8].mxu1 %vm142_vm2, %v552_v56  ;;  %v130_v56 = vld [vmem:[%s2724_s3 + $0x10] sm:$0xff] }
 0x40c   :  { %2197 = vmatprep.mubr.msk.f32.mxu1 %vm2419_vm1, %v2418_v22 }
 0x4d6   :  { %v388_v57 = vpop.f32.mrb[0].mxu0 }
 0x4d7   :  { %v2174_v58 = vpop.f32.mrb[1].mxu0  ;;  %2182 = vmatprep.mubr.msk.f32.mxu0 %vm142_vm2, %v388_v57 }
 0x4da   :  { %v464_v60 = vpop.f32.mrb[6].mxu1 }
 0x4db   :  { %v2179_v61 = vpop.f32.mrb[7].mxu1  ;;  %2183 = vmatmul.mubr.msk.f32.vlgmr.msra.gmra.mrb[2].mxu0 %vm142_vm2, %v464_v60 }
 0x4dc   :  { %2191 = vmatpush3.xpose.msk.msra.mxu0 %vm142_vm2, %v632_v59  ;;  %2192 = vmatprep.mubr.msk.f32.mxu0 %vm2419_vm1, %v2418_v22 }
 0x4dd   :  { %2200 = vmatprep.subr.mxu0 %v2418_v22 }
 0x4de   :  { %v625_v63 = vpop.f32.mrb[8].mxu1 }
 0x4df   :  { %v2189_v2 = vpop.f32.mrb[9].mxu1  ;;  %2193 = vmatmul.mubr.msk.f32.vlgmr.msra.gmra.mrb[4].mxu0 %vm142_vm2, %v630_v62  ;;  %v707_v3 = vsel %vm142_vm2, %v625_v63, -inf }
 0x4e0   :  { %708 = vmax.xlane.f32.xlu0 %v707_v3  ;;  %2202 = vmatprep.mubr.msk.f32.mxu0 %vm2419_vm1, %v2418_v22 }
 0x4f6   :  { %729 = vrot.lane.b32.xlu0 %v2500_v26, %s2425_s8 }
 0x4fa   :  { %964 = vrot.lane.b32.xlu0 %v2500_v26, %s2426_s9 }
 0x4fe   :  { %1042 = vrot.lane.b32.xlu0 %v2503_v27, %s2426_s9 }
 0x56d   :  { %v709_v4 = vpop.xlane.xlu0 %708 }
 0x56e   :  { %v713_v5 = vsub.f32 %v625_v63, %v709_v4 }
 0x570   :  { %v715_v6 = vmul.f32 1.442695, %v713_v5 }
 0x571   :  { %v730_v7 = vpop.permute.xlu0 %729 }
 0x572   :  { %2358 = vpow2.f32 %v715_v6  ;;  %2196 = vmatpush3.msra.mxu1 %v730_v7 }
 0x573   :  { %2210 = vmatprep.subr.mxu1 %v2418_v22 }
 0x575   :  { %v965_v17 = vpop.permute.xlu0 %964 }
 0x579   :  { %v1043_v19 = vpop.permute.xlu0 %1042 }
 0x57c   :  { %v2359_v8 = vpop.eup %2358 }
 0x57d   :  { %v719_v9 = vsel %vm142_vm2, %v2359_v8, 0.0 }
 0x57e   :  { %720 = vadd.xlane.f32.xlu1 %v719_v9 }
 0x58f   :  { %1044 = vrot.lane.b32.xlu1 %v2503_v27, %s2423_s30 }
 0x5b2   :  { %v703_v10 = vpop.f32.mrb[4].mxu0 }
 0x5b3   :  { %v2194_v11 = vpop.f32.mrb[5].mxu0  ;;  %v710_v12 = vsel %vm142_vm2, %v703_v10, -inf }
 0x5b4   :  { %711 = vmax.xlane.f32.xlu1 %v710_v12 }
 0x60b   :  { %v721_v14 = vpop.xlane.xlu1 %720 }
 0x60c   :  { %2360 = vrcp.f32 %v721_v14 }
 0x60f   :  { %v1045_v18 = vpop.permute.xlu1 %1044 }
 0x616   :  { %v2361_v15 = vpop.eup %2360 }
 0x617   :  { %v726_v16 = vmul.f32 %v2361_v15, %v2359_v8 }
 0x619   :  { %2198 = vmatmul.mubr.msk.f32.vlgmr.msra.gmra.mrb[10].mxu1 %vm142_vm2, %v726_v16 }
 0x61a   :  { %2211 = vmatpush3.xpose.msk.msra.mxu1 %vm142_vm2, %v967_v13  ;;  %2212 = vmatprep.mubr.msk.f32.mxu1 %vm2419_vm1, %v2418_v22 }
 0x61b   :  { %2215 = vmatprep.subr.mxu1 %v2418_v22 }
 0x61d   :  { %2213 = vmatmul.mubr.msk.f32.vlgmr.msra.gmra.mrb[12].mxu1 %vm142_vm2, %v965_v17 }
 0x61e   :  { %2216 = vmatpush3.xpose.msk.msra.mxu1 %vm142_vm2, %v1045_v18  ;;  %2217 = vmatprep.mubr.msk.f32.mxu1 %vm2419_vm1, %v2418_v22 }
 0x61f   :  { %2225 = vmatprep.subr.mxu1 %v2418_v22 }
 0x621   :  { %2218 = vmatmul.mubr.msk.f32.vlgmr.msra.gmra.mrb[14].mxu1 %vm142_vm2, %v1043_v19 }
 0x622   :  { %2227 = vmatprep.mubr.msk.f32.mxu1 %vm2419_vm1, %v2418_v22 }
 0x641   :  { %v712_v20 = vpop.xlane.xlu1 %711 }
 0x642   :  { %v714_v21 = vsub.f32 %v703_v10, %v712_v20 }
 0x644   :  { %v717_v23 = vmul.f32 1.442695, %v714_v21 }
 0x646   :  { %2362 = vpow2.f32 %v717_v23 }
 0x650   :  { %v2363_v24 = vpop.eup %2362 }
 0x651   :  { %v722_v25 = vsel %vm142_vm2, %v2363_v24, 0.0 }
 0x652   :  { %723 = vadd.xlane.f32.xlu0 %v722_v25 }
 0x668   :  { %805 = vrot.lane.b32.xlu0 %v2503_v27, %s2425_s8 }
 0x66c   :  { %1218 = vrot.lane.b32.xlu0 %v2503_v27, %s2427_s10 }
 0x670   :  { %1379 = vrot.lane.b32.xlu0 %v2500_v26, %s2428_s11 }
 0x674   :  { %1457 = vrot.lane.b32.xlu0 %v2503_v27, %s2428_s11 }
 0x678   :  { %1377 = vrot.lane.b32.xlu0 %v2500_v26, %s2429_s12 }
 0x6df   :  { %v724_v28 = vpop.xlane.xlu0 %723 }
 0x6e0   :  { %2364 = vrcp.f32 %v724_v28 }
 0x6e3   :  { %v806_v29 = vpop.permute.xlu0 %805 }
 0x6e4   :  { %2201 = vmatpush3.msra.mxu0 %v806_v29 }
 0x6e5   :  { %2205 = vmatprep.subr.mxu0 %v129_v41 }
 0x6e7   :  { %v1219_v30 = vpop.permute.xlu0 %1218 }
 0x6e8   :  { %2226 = vmatpush3.msra.mxu1 %v1219_v30 }
 0x6e9   :  { %2235 = vmatprep.subr.mxu1 %v2418_v22 }
 0x6ea   :  { %v2365_v31 = vpop.eup %2364 }
 0x6eb   :  { %v728_v32 = vmul.f32 %v2365_v31, %v2363_v24  ;;  %v1380_v58 = vpop.permute.xlu0 %1379 }
 0x6ec   :  { %v801_v33 = vpop.f32.mrb[10].mxu1 }
 0x6ed   :  { %v2199_v34 = vpop.f32.mrb[11].mxu1  ;;  %2203 = vmatmul.mubr.msk.f32.vlgmr.msra.gmra.mrb[6].mxu0 %vm142_vm2, %v728_v32 }
 0x6ee   :  { %2207 = vmatprep.mubr.msk.f32.mxu0 %vm142_vm2, %v801_v33  ;;  %2206 = vmatpush3.msra.mxu0 %v129_v41  ;;  %v131_v33 = vld [vmem:[%s2724_s3 + $0x18] sm:$0xff] }
 0x6ef   :  { %2220 = vmatprep.subr.mxu0 %v2418_v22  ;;  %v1458_v62 = vpop.permute.xlu0 %1457 }
 0x6f0   :  { %v1038_v35 = vpop.f32.mrb[12].mxu1 }
 0x6f1   :  { %v2214_v36 = vpop.f32.mrb[13].mxu1  ;;  %v1120_v37 = vsel %vm142_vm2, %v1038_v35, -inf }
 0x6f2   :  { %1121 = vmax.xlane.f32.xlu1 %v1120_v37  ;;  %v2042_v37 = vld [vmem:[%s2724_s3 + $0x60] ss:$0 sm:$0xff] }
 0x6f3   :  { %v1378_v2 = vpop.permute.xlu0 %1377 }
 0x6f4   :  { %v1116_v38 = vpop.f32.mrb[14].mxu1 }
 0x6f5   :  { %v2219_v39 = vpop.f32.mrb[15].mxu1  ;;  %v1123_v40 = vsel %vm142_vm2, %v1116_v38, -inf }
 0x6f6   :  { %1124 = vmax.xlane.f32.xlu1 %v1123_v40  ;;  %v137_v39 = vadd.f32 %v2042_v37, %v2462_v0  ;;  %v1806_v0 = vld [vmem:[%s2723_s2] sm:$0xff] }
 0x77f   :  { %v1122_v42 = vpop.xlane.xlu1 %1121 }
 0x780   :  { %v1126_v43 = vsub.f32 %v1038_v35, %v1122_v42 }
 0x782   :  { %v1128_v44 = vmul.f32 1.442695, %v1126_v43 }
 0x783   :  { %v1125_v45 = vpop.xlane.xlu1 %1124 }
 0x784   :  { %2366 = vpow2.f32 %v1128_v44  ;;  %v1127_v46 = vsub.f32 %v1116_v38, %v1125_v45  ;;  %v138_v38 = vadd.f32 %v2042_v37, %v2467_v1  ;;  %v1807_v1 = vld [vmem:[%s2723_s2 + $0x8] sm:$0xff] }
 0x786   :  { %v1130_v47 = vmul.f32 1.442695, %v1127_v46 }
 0x788   :  { %2368 = vpow2.f32 %v1130_v47 }
 0x78e   :  { %v2367_v48 = vpop.eup %2366 }
 0x78f   :  { %v1132_v49 = vsel %vm142_vm2, %v2367_v48, 0.0 }
 0x790   :  { %1133 = vadd.xlane.f32.xlu1 %v1132_v49  ;;  %v2298_v49 = vpack.c.bf16 %v1807_v1, %v1806_v0 }
 0x792   :  { %v2369_v50 = vpop.eup %2368 }
 0x793   :  { %v1135_v51 = vsel %vm142_vm2, %v2369_v50, 0.0 }
 0x794   :  { %1136 = vadd.xlane.f32.xlu1 %v1135_v51 }
 0x7a5   :  { %1142 = vrot.lane.b32.xlu1 %v2500_v26, %s2427_s10 }
 0x7a9   :  { %1455 = vrot.lane.b32.xlu1 %v2503_v27, %s2429_s12 }
 0x7c0   :  { %v877_v52 = vpop.f32.mrb[6].mxu0 }
 0x7c1   :  { %v2204_v53 = vpop.f32.mrb[7].mxu0  ;;  %2208 = vmatmul.mubr.msk.f32.vlgmr.msra.gmra.mrb[2].mxu0 %vm142_vm2, %v877_v52 }
 0x7c2   :  { %2222 = vmatprep.mubr.msk.f32.mxu0 %vm2419_vm1, %v2418_v22 }
 0x81d   :  { %v1134_v54 = vpop.xlane.xlu1 %1133 }
 0x81e   :  { %2370 = vrcp.f32 %v1134_v54 }
 0x821   :  { %v1137_v55 = vpop.xlane.xlu1 %1136 }
 0x822   :  { %2372 = vrcp.f32 %v1137_v55 }
 0x825   :  { %v1143_v57 = vpop.permute.xlu1 %1142 }
 0x826   :  { %2221 = vmatpush3.msra.mxu0 %v1143_v57 }
 0x827   :  { %2230 = vmatprep.subr.mxu0 %v130_v56 }
 0x828   :  { %v2371_v59 = vpop.eup %2370 }
 0x829   :  { %v1139_v60 = vmul.f32 %v2371_v59, %v2367_v48  ;;  %v1456_v7 = vpop.permute.xlu1 %1455  ;;  %v1808_v48 = vld [vmem:[%s2723_s2 + $0x10] sm:$0xff] }
 0x82b   :  { %2223 = vmatmul.mubr.msk.f32.vlgmr.msra.gmra.mrb[8].mxu0 %vm142_vm2, %v1139_v60 }
 0x82c   :  { %v2373_v61 = vpop.eup %2372  ;;  %2231 = vmatpush3.msra.mxu0 %v130_v56 }
 0x82d   :  { %v1141_v63 = vmul.f32 %v2373_v61, %v2369_v50  ;;  %2240 = vmatprep.subr.mxu0 %v2418_v22  ;;  %v1809_v50 = vld [vmem:[%s2723_s2 + $0x18] sm:$0xff] }
 0x82e   :  { %v2302_v51 = vpack.c.bf16 %v1809_v50, %v1808_v48 }
 0x82f   :  { %2228 = vmatmul.mubr.msk.f32.vlgmr.msra.gmra.mrb[16].mxu1 %vm142_vm2, %v1141_v63 }
 0x830   :  { %2236 = vmatpush3.xpose.msk.msra.mxu1 %vm142_vm2, %v1380_v58  ;;  %2237 = vmatprep.mubr.msk.f32.mxu1 %vm2419_vm1, %v2418_v22 }
 0x831   :  { %2245 = vmatprep.subr.mxu1 %v2418_v22 }
 0x833   :  { %2238 = vmatmul.mubr.msk.f32.vlgmr.msra.gmra.mrb[18].mxu1 %vm142_vm2, %v1378_v2 }
 0x834   :  { %2247 = vmatprep.mubr.msk.f32.mxu1 %vm2419_vm1, %v2418_v22 }
 0x8fe   :  { %v1214_v3 = vpop.f32.mrb[8].mxu0 }
 0x8ff   :  { %v2224_v4 = vpop.f32.mrb[9].mxu0  ;;  %2232 = vmatprep.mubr.msk.f32.mxu0 %vm142_vm2, %v1214_v3 }
 0x902   :  { %v1290_v5 = vpop.f32.mrb[16].mxu1 }
 0x903   :  { %v2229_v6 = vpop.f32.mrb[17].mxu1  ;;  %2233 = vmatmul.mubr.msk.f32.vlgmr.msra.gmra.mrb[2].mxu0 %vm142_vm2, %v1290_v5 }
 0x904   :  { %2241 = vmatpush3.xpose.msk.msra.mxu0 %vm142_vm2, %v1458_v62  ;;  %2242 = vmatprep.mubr.msk.f32.mxu0 %vm2419_vm1, %v2418_v22  ;;  %v2075_v62 = vld [vmem:[%s2723_s2 + $0x20] ss:$0 sm:$0xff] }
 0x905   :  { %2250 = vmatprep.subr.mxu0 %v2418_v22 }
 0x906   :  { %v1451_v8 = vpop.f32.mrb[18].mxu1 }
 0x907   :  { %v2239_v9 = vpop.f32.mrb[19].mxu1  ;;  %2243 = vmatmul.mubr.msk.f32.vlgmr.msra.gmra.mrb[10].mxu0 %vm142_vm2, %v1456_v7  ;;  %v1533_v10 = vsel %vm142_vm2, %v1451_v8, -inf }
 0x908   :  { %1534 = vmax.xlane.f32.xlu0 %v1533_v10  ;;  %2252 = vmatprep.mubr.msk.f32.mxu0 %vm2419_vm1, %v2418_v22 }
 0x995   :  { %v1535_v11 = vpop.xlane.xlu0 %1534 }
 0x996   :  { %v1539_v12 = vsub.f32 %v1451_v8, %v1535_v11  ;;  %v1920_v11 = vld [vmem:[%s2724_s3 + $0x20] sm:$0xff] }
 0x998   :  { %v1541_v13 = vmul.f32 1.442695, %v1539_v12  ;;  %v1921_v12 = vld [vmem:[%s2724_s3 + $0x28] sm:$0xff] }
 0x99a   :  { %2374 = vpow2.f32 %v1541_v13  ;;  %v1922_v13 = vld [vmem:[%s2724_s3 + $0x30] sm:$0xff] }
 0x9a4   :  { %v2375_v14 = vpop.eup %2374 }
 0x9a5   :  { %v1545_v15 = vsel %vm142_vm2, %v2375_v14, 0.0 }
 0x9a6   :  { %1546 = vadd.xlane.f32.xlu0 %v1545_v15  ;;  %v1923_v15 = vld [vmem:[%s2724_s3 + $0x38] sm:$0xff] }
 0x9da   :  { %v1529_v16 = vpop.f32.mrb[10].mxu0 }
 0x9db   :  { %v2244_v17 = vpop.f32.mrb[11].mxu0  ;;  %v1536_v18 = vsel %vm142_vm2, %v1529_v16, -inf }
 0x9dc   :  { %1537 = vmax.xlane.f32.xlu1 %v1536_v18  ;;  %v1924_v17 = vld [vmem:[%s2724_s3 + $0x40] sm:$0xff]  ;;  %v1925_v18 = vld [vmem:[%s2724_s3 + $0x48] sm:$0xff] }
 0x9ed   :  { %1631 = vrot.lane.b32.xlu1 %v2503_v27, %s2430_s17 }
 0xa33   :  { %v1547_v25 = vpop.xlane.xlu0 %1546 }
 0xa69   :  { %v1538_v19 = vpop.xlane.xlu1 %1537 }
 0xa6a   :  { %v1540_v20 = vsub.f32 %v1529_v16, %v1538_v19  ;;  %v2310_v16 = vpack.c.bf16 %v1923_v15, %v1922_v13 }
 0xa6c   :  { %v1543_v21 = vmul.f32 1.442695, %v1540_v20 }
 0xa6d   :  { %v1632_v22 = vpop.permute.xlu1 %1631 }
 0xa6e   :  { %2376 = vpow2.f32 %v1543_v21  ;;  %2251 = vmatpush3.msra.mxu0 %v1632_v22 }
 0xa6f   :  { %2378 = vrcp.f32 %v1547_v25  ;;  %2255 = vmatprep.subr.mxu0 %v131_v33  ;;  %v1927_v25 = vld [vmem:[%s2724_s3 + $0x58] sm:$0xff] }
 0xa78   :  { %v2377_v23 = vpop.eup %2376 }
 0xa79   :  { %v1548_v24 = vsel %vm142_vm2, %v2377_v23, 0.0  ;;  %v2379_v29 = vpop.eup %2378 }
 0xa7a   :  { %1549 = vadd.xlane.f32.xlu0 %v1548_v24  ;;  %v1552_v30 = vmul.f32 %v2379_v29, %v2375_v14  ;;  %v2306_v14 = vpack.c.bf16 %v1921_v12, %v1920_v11  ;;  %v1926_v24 = vld [vmem:[%s2724_s3 + $0x50] sm:$0xff] }
 0xa90   :  { %1555 = vrot.lane.b32.xlu0 %v2500_v26, %s2430_s17 }
 0xb07   :  { %v1550_v28 = vpop.xlane.xlu0 %1549 }
 0xb08   :  { %2380 = vrcp.f32 %v1550_v28  ;;  %v2318_v28 = vpack.c.bf16 %v1927_v25, %v1926_v24 }
 0xb0b   :  { %v1556_v31 = vpop.permute.xlu0 %1555 }
 0xb0c   :  { %2246 = vmatpush3.msra.mxu1 %v1556_v31 }
 0xb0d   :  { %2248 = vmatmul.mubr.msk.f32.vlgmr.msra.gmra.mrb[20].mxu1 %vm142_vm2, %v1552_v30  ;;  %2299 = vmatprep.subr.bf16.mxu1 %v2298_v49 }
 0xb0e   :  { %2301 = vmatpush3.bf16.msra.mxu1 %v2298_v49 }
 0xb0f   :  { %2303 = vmatprep.subr.bf16.mxu1 %v2302_v51 }
 0xb12   :  { %v2381_v27 = vpop.eup %2380  ;;  %2305 = vmatpush3.bf16.msra.mxu1 %v2302_v51 }
 0xb13   :  { %v1554_v32 = vmul.f32 %v2381_v27, %v2377_v23  ;;  %v2314_v23 = vpack.c.bf16 %v1925_v18, %v1924_v17 }
 0xb15   :  { %2253 = vmatmul.mubr.msk.f32.vlgmr.msra.gmra.mrb[12].mxu0 %vm142_vm2, %v1554_v32 }
 0xb16   :  { %2256 = vmatpush3.msra.mxu0 %v131_v33 }
 0xb17   :  { %2307 = vmatprep.subr.bf16.mxu0 %v2306_v14 }
 0xbe0   :  { %v1627_v26 = vpop.f32.mrb[20].mxu1 }
 0xbe1   :  { %v2249_v34 = vpop.f32.mrb[21].mxu1  ;;  %2257 = vmatprep.mubr.msk.f32.mxu0 %vm142_vm2, %v1627_v26  ;;  %v2080_v26 = vld [vmem:[%s2724_s3 + $0x61] ss:$0 sm:$0xff] }
 0xbe8   :  { %v1703_v35 = vpop.f32.mrb[12].mxu0 }
 0xbe9   :  { %v2254_v36 = vpop.f32.mrb[13].mxu0  ;;  %2258 = vmatmul.mubr.msk.f32.vlgmr.msra.gmra.mrb[2].mxu0 %vm142_vm2, %v1703_v35 }
 0xbea   :  { %2309 = vmatpush3.bf16.msra.mxu0 %v2306_v14 }
 0xbeb   :  { %2311 = vmatprep.subr.bf16.mxu0 %v2310_v16 }
 0xbee   :  { %2313 = vmatpush3.bf16.msra.mxu0 %v2310_v16 }
 0xbef   :  { %2315 = vmatprep.subr.bf16.mxu0 %v2314_v23 }
 0xbf2   :  { %2317 = vmatpush3.bf16.msra.mxu0 %v2314_v23 }
 0xbf3   :  { %2319 = vmatprep.subr.bf16.mxu0 %v2318_v28 }
 0xbf6   :  { %2321 = vmatpush3.bf16.msra.mxu0 %v2318_v28 }
 0xcbc   :  { %v2259_v40 = vpop.f32.mrb[2].mxu0 }
 0xcbd   :  { %v2645_v41 = vadd.f32 %v2259_v40, %v138_v38  ;;  %v1779_v42 = vpop.f32.mrb[3].mxu0 }
 0xcbe   :  { %v2647_v43 = vadd.f32 %v1779_v42, %v137_v39 }
 0xcbf   :  { %v1791_v44 = vmul.f32 %v2645_v41, %v2645_v41 }
 0xcc0   :  { %v1790_v45 = vmul.f32 %v2647_v43, %v2647_v43 }
 0xcc1   :  { %v1795_v46 = vsel %vm22_vm0, %v1791_v44, 0.0 }
 0xcc2   :  { %1796 = vadd.xlane.f32.xlu0 %v1795_v46  ;;  %v1792_v47 = vsel %vm22_vm0, %v1790_v45, 0.0 }
 0xcc3   :  { %1793 = vadd.xlane.f32.xlu1 %v1792_v47 }
 0xd4f   :  { %v1797_v52 = vpop.xlane.xlu0 %1796 }
 0xd50   :  { %v1799_v53 = vmul.f32 0.03125, %v1797_v52  ;;  %v1794_v54 = vpop.xlane.xlu1 %1793 }
 0xd51   :  { %v1798_v55 = vmul.f32 0.03125, %v1794_v54 }
 0xd52   :  { %v1801_v56 = vadd.f32 1e-06, %v1799_v53 }
 0xd53   :  { %v1800_v57 = vadd.f32 1e-06, %v1798_v55 }
 0xd54   :  { %2382 = vrsqrt.f32 %v1801_v56 }
 0xd55   :  { %2384 = vrsqrt.f32 %v1800_v57 }
 0xd5e   :  { %v2383_v58 = vpop.eup %2382 }
 0xd5f   :  { %v2385_v59 = vpop.eup %2384  ;;  %v1805_v61 = vmul.f32 %v2383_v58, %v2645_v41 }
 0xd60   :  { %v1804_v60 = vmul.f32 %v2385_v59, %v2647_v43 }
 0xd62   :  { %2268 = vmatprep.mubr.msk.f32.mxu1 %vm22_vm0, %v1804_v60 }
 0xd63   :  { %2269 = vmatmul.mubr.msk.f32.vlgmr.msra.gmra.mrb[22].mxu1 %vm22_vm0, %v1805_v61 }
 0xe36   :  { %v2270_v63 = vpop.f32.mrb[22].mxu1 }
 0xe37   :  { %v1893_v2 = vadd.f32 %v2270_v63, %v2075_v62  ;;  %v1887_v3 = vpop.f32.mrb[23].mxu1 }
 0xe38   :  { %v1888_v4 = vadd.f32 %v2075_v62, %v1887_v3 }
 0xe39   :  { %v2079_v5 = vmul.f32 -1.442695, %v1893_v2 }
 0xe3a   :  { %v2078_v6 = vmul.f32 -1.442695, %v1888_v4 }
 0xe3b   :  { %2386 = vpow2.f32 %v2079_v5 }
 0xe3c   :  { %2388 = vpow2.f32 %v2078_v6 }
 0xe45   :  { %v2387_v7 = vpop.eup %2386 }
 0xe46   :  { %v2389_v8 = vpop.eup %2388  ;;  %v1903_v9 = vadd.f32 1.0, %v2387_v7 }
 0xe47   :  { %v1902_v10 = vadd.f32 1.0, %v2389_v8 }
 0xe48   :  { %2390 = vrcp.f32 %v1903_v9 }
 0xe49   :  { %2392 = vrcp.f32 %v1902_v10 }
 0xe52   :  { %v2391_v19 = vpop.eup %2390 }
 0xe53   :  { %v2393_v20 = vpop.eup %2392  ;;  %v1909_v21 = vmul.f32 %v2391_v19, %v1893_v2 }
 0xe54   :  { %v1908_v22 = vmul.f32 %v2393_v20, %v1888_v4 }
 0xe55   :  { %1914 = vrot.lane.b32.xlu1 %v1909_v21, %s2422_s29 }
 0xe56   :  { %1912 = vrot.lane.b32.xlu0 %v1908_v22, %s2422_s29 }
 0xec7   :  { %v1915_v31 = vpop.permute.xlu1 %1914 }
 0xec8   :  { %v1913_v29 = vpop.permute.xlu0 %1912  ;;  %v1919_v27 = vmul.f32 %v1915_v31, %v1893_v2 }
 0xec9   :  { %v1918_v30 = vmul.f32 %v1913_v29, %v1888_v4 }
 0xecb   :  { %1935 = vrot.lane.b32.xlu1 %v1918_v30, %s2422_s29 }
 0xecf   :  { %1937 = vrot.lane.b32.xlu1 %v1919_v27, %s2422_s29  ;;  %s2394_s29 = scalar_lea.vmem %s2029_s22, 256 }
 0xed0   :  { %p2395_p0 = scmp.ne.s32.totalorder %s2029_s22, %s2394_s29  ;;  %p2400_p2 = scmp.lt.s32.totalorder %s2394_s29, %s2394_s29 }
 0xed2   :  { %p2401_p3 = por %p2400_p2, %p2399_p1 }
 0xed4   :  { %p2402_p4 = pnand %p2401_p3, %p2395_p0 }
 0xf3d   :  { %v1936_v32 = vpop.permute.xlu1 %1935 }
 0xf3e   :  { %2287 = vmatprep.mubr.msk.f32.mxu0 %vm1939_vm3, %v1936_v32 }
 0xf41   :  { %v1938_v33 = vpop.permute.xlu1 %1937 }
 0xf42   :  { %2288 = vmatmul.mubr.msk.f32.vlgmr.msra.gmra.mrb[14].mxu0 %vm1939_vm3, %v1938_v33 }
0x1015   :  { %v2289_v34 = vpop.f32.mrb[14].mxu0 }
0x1016   :  { %v2016_v35 = vadd.f32 %v2289_v34, %v2080_v26  ;;  %v2010_v36 = vpop.f32.mrb[15].mxu0 }
0x1017   :  { %v2011_v37 = vadd.f32 %v2080_v26, %v2010_v36 }
0x1018   :  { %v2020_v38 = vadd.f32 %v2645_v41, %v2016_v35 }
0x1019   :  { %v2019_v39 = vadd.f32 %v2647_v43, %v2011_v37 }
0x101a   :  { %2022 = vst.msk [vmem:[#allocation2 + $0x8] sm:$0xff] %vm22_vm0, %v2020_v38 }
0x101b   :  { %2021 = vst.msk [vmem:[#allocation2] sm:$0xff] %vm22_vm0, %v2019_v39 }
0x101c   :  { %2405 = shalt.err (!%p2402_p4)
}
0x101d   :  { %s2406_s24 = scalar_lea.hbm %s2725_s4, 256 }
0x101e   :  { %p2407_p5 = scmp.ne.s32.totalorder %s2725_s4, %s2406_s24  ;;  %p2410_p6 = scmp.lt.u32.totalorder %s2406_s24, %s2725_s4 }
0x1020   :  { %p2412_p7 = pnand %p2410_p6, %p2407_p5 }
0x1022   :  { %2415 = shalt.err (!%p2412_p7)
}
0x1023   :  { %s2432_s1 = smov 128   ;;  %s2433_s30 = smov 8  }
0x1024   :  { %2034 = dma.vmem_to_hbm [thread:$0]  %s2029_s22, 256, %s2725_s4, [#allocation3], %s2432_s1, %s2432_s1, %s2433_s30  }
0x1025   :  { %2416 = dma.done.wait [#allocation3], 256  }
0x1026   :  { %2417 = vsyncadd [#allocation3], 4294967040 }
0x1027   :  { %2038 = vsyncpa [#allocation3], 1 }

</bundles_post_ra>
